<compile_context>
chip_gen: v5e
topology: v5e:2x2
jax: 0.10.0
libtpu: 0.0.40
codegen_flags: <defaults>
</compile_context>

<pallas_src>
import functools

import jax
import jax.numpy as jnp
from jax.experimental import pallas as pl
from jax.experimental.pallas import tpu as pltpu


def _round_up(x, m):
    return ((x + m - 1) // m) * m


def _bf16_elementwise_ok():
    """bf16 VPU/EUP exists on v6e/v7x; keep f32 tanh/bias elsewhere (v5e)."""
    try:
        kind = jax.devices()[0].device_kind.lower()
    except Exception:
        return False
    return ("v6" in kind) or ("v7" in kind)


def _vmem_limit(buffer_bytes):
    """Scoped-VMEM request from the actual buffer set, with headroom, clamped
    to [32 MiB, 64 MiB] so one value is safe on v5e / v6e / v7x."""
    limit = int(buffer_bytes * 1.5) + (4 << 20)
    return max(min(limit, 64 << 20), 32 << 20)


# --------------------------------------------------------------------------- #
# Kernels
# --------------------------------------------------------------------------- #

def _head_full_kernel(x_ref, wd_ref, bd_ref, wo_ref, bo_ref, o_ref, acc_ref, *,
                      tanh_bf16):
    """o = tanh(x @ Wd + bd) @ Wo + bo.

    Grid = (batch blocks, K blocks).  The H contraction of the dense matmul is
    split over the last ("arbitrary") grid axis; acc_ref is the f32 (TB, H)
    VMEM accumulator.  tanh + out_proj run only on the final K step.
    """
    k = pl.program_id(1)
    nk = pl.num_programs(1)

    part = jnp.dot(x_ref[...].astype(jnp.bfloat16), wd_ref[...],
                   preferred_element_type=jnp.float32)          # (TB, H) f32

    @pl.when(k == 0)
    def _():
        acc_ref[...] = part

    @pl.when(k > 0)
    def _():
        acc_ref[...] += part

    @pl.when(k == nk - 1)
    def _():
        h = acc_ref[...] + bd_ref[...]
        if tanh_bf16:
            h = jnp.tanh(h.astype(jnp.bfloat16))                # v6e/v7x bf16 EUP
        else:
            h = jnp.tanh(h).astype(jnp.bfloat16)                # v5e f32 EUP
        out = jnp.dot(h, wo_ref[...], preferred_element_type=jnp.float32)
        o_ref[...] = (out + bo_ref[...]).astype(o_ref.dtype)


def _head_proj_kernel(x_ref, wo_ref, bo_ref, o_ref):
    """o = x @ Wo + bo   (do_not_summary = True path)."""
    out = jnp.dot(x_ref[...].astype(jnp.bfloat16), wo_ref[...],
                  preferred_element_type=jnp.float32)
    o_ref[...] = (out + bo_ref[...]).astype(o_ref.dtype)


# --------------------------------------------------------------------------- #
# Parameter packing (one-time, hoisted out of the forward path)
# --------------------------------------------------------------------------- #

def pack_head_params(params, *, do_not_summary=False):
    """Convert raw (PyTorch-layout, f32) params to kernel-ready form once:
    bf16 MXU weights, f32 (1, out) biases, out_proj padded to a lane-dense
    multiple of 128 output columns.  Returns (packed_dict, num_labels)."""
    wo = jnp.asarray(params["out_proj_w"]).astype(jnp.bfloat16)        # (H, L)
    bo = jnp.asarray(params["out_proj_b"]).astype(jnp.float32).reshape(1, -1)
    num_labels = wo.shape[1]
    lp = _round_up(num_labels, 128)
    if lp != num_labels:
        wo = jnp.pad(wo, ((0, 0), (0, lp - num_labels)))
        bo = jnp.pad(bo, ((0, 0), (0, lp - num_labels)))
    packed = {"out_proj_w": wo, "out_proj_b": bo}
    if not do_not_summary:
        packed["dense_w"] = jnp.asarray(params["dense_w"]).astype(jnp.bfloat16)
        packed["dense_b"] = (jnp.asarray(params["dense_b"])
                             .astype(jnp.float32).reshape(1, -1))
    return packed, num_labels


# --------------------------------------------------------------------------- #
# Forward wrapper
# --------------------------------------------------------------------------- #

def electra_classification_head(features, packed, num_labels, *,
                                do_not_summary=False, batch_tile=512,
                                k_tile=None):
    """features: (B, S, H) f32 or bf16.  packed: output of pack_head_params."""
    B, S, H = features.shape
    wo = packed["out_proj_w"]                                   # (H, Lp) bf16
    bo = packed["out_proj_b"]                                   # (1, Lp) f32
    Lp = wo.shape[1]

    # ---- batch tiling --------------------------------------------------- #
    TB = B if B <= batch_tile else batch_tile
    nb = pl.cdiv(B, TB)
    # Only megacore-shard the batch axis when there is work to split;
    # otherwise both TCs would each DMA their own copy of the resident weights.
    batch_sem = "parallel" if nb >= 2 else "arbitrary"

    # ---- CLS gather folded into the BlockSpec --------------------------- #
    # View features as (B, S*H) (free reshape of contiguous trailing dims) and
    # DMA only the first H lanes of each row == features[:, 0, :].
    if H % 128 == 0:
        x_in = features.reshape(B, S * H)
    else:
        x_in = features[:, 0, :]                                # host fallback
    x_itemsize = jnp.dtype(x_in.dtype).itemsize
    out_itemsize = jnp.dtype(features.dtype).itemsize

    out_shape = jax.ShapeDtypeStruct((B, Lp), features.dtype)

    # ------------------------------------------------------------------- #
    # do_not_summary = True: out_proj only
    # ------------------------------------------------------------------- #
    if do_not_summary:
        vmem_bytes = (2 * TB * H * x_itemsize                   # x tiles (x2)
                      + H * Lp * 2 + Lp * 4                     # resident wo/bo
                      + 2 * TB * Lp * out_itemsize)             # out tiles (x2)
        cost = pl.CostEstimate(
            flops=2 * B * H * Lp,
            transcendentals=0,
            bytes_accessed=(B * H * x_itemsize + H * Lp * 2 + Lp * 4
                            + B * Lp * out_itemsize),
        )
        out = pl.pallas_call(
            _head_proj_kernel,
            out_shape=out_shape,
            grid=(nb,),
            in_specs=[
                pl.BlockSpec((TB, H), lambda i: (i, 0)),
                pl.BlockSpec((H, Lp), lambda i: (0, 0),
                             pipeline_mode=pl.Buffered(1)),
                pl.BlockSpec((1, Lp), lambda i: (0, 0),
                             pipeline_mode=pl.Buffered(1)),
            ],
            out_specs=pl.BlockSpec((TB, Lp), lambda i: (i, 0)),
            compiler_params=pltpu.CompilerParams(
                dimension_semantics=(batch_sem,),
                vmem_limit_bytes=_vmem_limit(vmem_bytes)),
            cost_estimate=cost,
        )(x_in, wo, bo)
        return out[:, :num_labels]

    # ------------------------------------------------------------------- #
    # Full path: dense -> tanh -> out_proj
    # ------------------------------------------------------------------- #
    wd = packed["dense_w"]                                      # (H, H)  bf16
    bd = packed["dense_b"]                                      # (1, H)  f32

    # K (hidden contraction) tiling of the dense matmul.
    if k_tile is not None:
        tk = int(k_tile)
    elif H % 128 == 0 and H >= 2048:
        tk = next(t for t in (512, 256, 128) if H % t == 0)
    else:
        tk = H
    assert H % tk == 0, "k_tile must divide hidden size"
    nk = H // tk
    assert nk == 1 or tk % 128 == 0, "k_tile must be a multiple of 128"

    vmem_bytes = (2 * TB * tk * x_itemsize                      # x tiles (x2)
                  + (1 if nk == 1 else 2) * tk * H * 2          # Wd tile(s)
                  + H * 4 + H * Lp * 2 + Lp * 4                 # bd / wo / bo
                  + 2 * TB * Lp * out_itemsize                  # out tiles (x2)
                  + TB * H * 4)                                 # acc scratch
    cost = pl.CostEstimate(
        flops=2 * B * H * H + 2 * B * H * Lp,
        transcendentals=B * H,
        bytes_accessed=(B * H * x_itemsize
                        + (nb if nk > 1 else 1) * H * H * 2
                        + H * 4 + H * Lp * 2 + Lp * 4
                        + B * Lp * out_itemsize),
    )

    wd_mode = pl.Buffered(1) if nk == 1 else pl.Buffered(2)
    kernel = functools.partial(_head_full_kernel,
                               tanh_bf16=_bf16_elementwise_ok())

    out = pl.pallas_call(
        kernel,
        out_shape=out_shape,
        grid=(nb, nk),
        in_specs=[
            pl.BlockSpec((TB, tk), lambda i, k: (i, k)),
            pl.BlockSpec((tk, H), lambda i, k: (k, 0), pipeline_mode=wd_mode),
            pl.BlockSpec((1, H), lambda i, k: (0, 0),
                         pipeline_mode=pl.Buffered(1)),
            pl.BlockSpec((H, Lp), lambda i, k: (0, 0),
                         pipeline_mode=pl.Buffered(1)),
            pl.BlockSpec((1, Lp), lambda i, k: (0, 0),
                         pipeline_mode=pl.Buffered(1)),
        ],
        out_specs=pl.BlockSpec((TB, Lp), lambda i, k: (i, 0)),
        scratch_shapes=[pltpu.VMEM((TB, H), jnp.float32)],
        compiler_params=pltpu.CompilerParams(
            dimension_semantics=(batch_sem, "arbitrary"),
            vmem_limit_bytes=_vmem_limit(vmem_bytes)),
        cost_estimate=cost,
    )(x_in, wd, bd, wo, bo)
    return out[:, :num_labels]


# --------------------------------------------------------------------------- #
# Reference / test harness
# --------------------------------------------------------------------------- #

def init_params(key, hidden_size, num_labels):
    """Deterministic synthetic raw parameters, (in, out) layout, f32."""
    k1, k2, k3, k4 = jax.random.split(key, 4)
    scale = 1.0 / jnp.sqrt(hidden_size)
    return {
        "dense_w": jax.random.normal(k1, (hidden_size, hidden_size),
                                     jnp.float32) * scale,
        "dense_b": jax.random.normal(k2, (1, hidden_size), jnp.float32) * 0.01,
        "out_proj_w": jax.random.normal(k3, (hidden_size, num_labels),
                                        jnp.float32) * scale,
        "out_proj_b": jax.random.normal(k4, (1, num_labels), jnp.float32) * 0.01,
    }


def reference_forward(features, params, *, do_not_summary=False):
    """Pure-JAX f32 reference mirroring the PyTorch forward (eval-mode dropout).
    Note: the kernel runs its matmuls in bf16 (f32 accumulation) — a deliberate
    numerics deviation acceptable for a classification head."""
    x = features[:, 0, :].astype(jnp.float32)
    if not do_not_summary:
        x = jnp.tanh(x @ params["dense_w"].astype(jnp.float32)
                     + params["dense_b"])
    return x @ params["out_proj_w"].astype(jnp.float32) + params["out_proj_b"]


if __name__ == "__main__":
    key = jax.random.PRNGKey(0)
    k_feat, k_par, k_feat2, k_par2 = jax.random.split(key, 4)

    # --- Config 1: lane-aligned hidden, single batch block ---------------- #
    batch, seq, hidden, num_labels = 8, 8, 128, 4
    features = jax.random.normal(k_feat, (batch, seq, hidden), jnp.float32)
    raw = init_params(k_par, hidden, num_labels)

    packed_full, L = pack_head_params(raw, do_not_summary=False)
    out = electra_classification_head(features, packed_full, L,
                                      do_not_summary=False)
    out = jax.block_until_ready(out)
    ref = reference_forward(features, raw, do_not_summary=False)
    assert out.shape == (batch, num_labels)
    err = float(jnp.max(jnp.abs(out - ref)))
    assert jnp.allclose(out, ref, atol=2e-2, rtol=2e-2), \
        "full path mismatch, max abs err = %e" % err

    packed_proj, Lp_ = pack_head_params(raw, do_not_summary=True)
    out2 = electra_classification_head(features, packed_proj, Lp_,
                                       do_not_summary=True)
    out2 = jax.block_until_ready(out2)
    ref2 = reference_forward(features, raw, do_not_summary=True)
    assert out2.shape == (batch, num_labels)
    err2 = float(jnp.max(jnp.abs(out2 - ref2)))
    assert jnp.allclose(out2, ref2, atol=2e-2, rtol=2e-2), \
        "proj path mismatch, max abs err = %e" % err2

    # --- Config 2: exercise batch tiling (nb=2) + K-split (nk=2) ---------- #
    batch2, seq2, hidden2, labels2 = 16, 4, 256, 3
    features2 = jax.random.normal(k_feat2, (batch2, seq2, hidden2), jnp.float32)
    raw2 = init_params(k_par2, hidden2, labels2)
    packed2, L2 = pack_head_params(raw2, do_not_summary=False)
    out3 = electra_classification_head(features2, packed2, L2,
                                       do_not_summary=False,
                                       batch_tile=8, k_tile=128)
    out3 = jax.block_until_ready(out3)
    ref3 = reference_forward(features2, raw2, do_not_summary=False)
    assert out3.shape == (batch2, labels2)
    err3 = float(jnp.max(jnp.abs(out3 - ref3)))
    assert jnp.allclose(out3, ref3, atol=2e-2, rtol=2e-2), \
        "k-split path mismatch, max abs err = %e" % err3

    print("KERNEL_OK")
</pallas_src>

<mosaic_0001>
module attributes {stable_mosaic.version = 11 : i64} {
  func.func @_head_full_kernel(%arg0: i32, %arg1: i32, %arg2: memref<8x128xf32, #tpu.memory_space<vmem>>, %arg3: memref<128x128xbf16, #tpu.memory_space<vmem>>, %arg4: memref<1x128xf32, #tpu.memory_space<vmem>>, %arg5: memref<128x128xbf16, #tpu.memory_space<vmem>>, %arg6: memref<1x128xf32, #tpu.memory_space<vmem>>, %arg7: memref<8x128xf32, #tpu.memory_space<vmem>>, %arg8: memref<8x128xf32, #tpu.memory_space<vmem>>) attributes {dimension_semantics = [#tpu.dimension_semantics<arbitrary>, #tpu.dimension_semantics<arbitrary>], iteration_bounds = array<i64: 1, 1>, scalar_prefetch = 0 : i64, scratch_operands = 1 : i64, tpu.core_type = #tpu.core_type<tc>, window_params = [{transform_indices = @transform_0, window_bounds = array<i64: 8, 128>}, {pipeline_mode = #tpu.pipeline_mode<synchronous>, transform_indices = @transform_1, window_bounds = array<i64: 128, 128>}, {pipeline_mode = #tpu.pipeline_mode<synchronous>, transform_indices = @transform_2, window_bounds = array<i64: 1, 128>}, {pipeline_mode = #tpu.pipeline_mode<synchronous>, transform_indices = @transform_3, window_bounds = array<i64: 128, 128>}, {pipeline_mode = #tpu.pipeline_mode<synchronous>, transform_indices = @transform_4, window_bounds = array<i64: 1, 128>}, {transform_indices = @transform_5, window_bounds = array<i64: 8, 128>}]} {
    %c0 = arith.constant 0 : index
    %c0_0 = arith.constant 0 : index
    %0 = vector.load %arg2[%c0, %c0_0] : memref<8x128xf32, #tpu.memory_space<vmem>>, vector<8x128xf32>
    %1 = arith.truncf %0 : vector<8x128xf32> to vector<8x128xbf16>
    %c0_1 = arith.constant 0 : index
    %c0_2 = arith.constant 0 : index
    %2 = vector.load %arg3[%c0_1, %c0_2] : memref<128x128xbf16, #tpu.memory_space<vmem>>, vector<128x128xbf16>
    %cst = arith.constant dense<0.000000e+00> : vector<8x128xf32>
    %3 = tpu.matmul %1, %2, %cst {dimension_numbers = #tpu.dot_dimension_numbers<[1], [0], [0], [1], [0, 0, 1, 1], [], []>} : vector<8x128xbf16>, vector<128x128xbf16>, vector<8x128xf32> -> vector<8x128xf32>
    %c0_i32 = arith.constant 0 : i32
    %4 = arith.cmpi eq, %arg1, %c0_i32 : i32
    %5 = arith.extui %4 : i1 to i32
    %c0_i32_3 = arith.constant 0 : i32
    %6 = arith.cmpi ne, %5, %c0_i32_3 : i32
    scf.if %6 {
      %c0_8 = arith.constant 0 : index
      %c0_9 = arith.constant 0 : index
      %13 = vector.load %arg8[%c0_8, %c0_9] : memref<8x128xf32, #tpu.memory_space<vmem>>, vector<8x128xf32>
      tpu.vector_store %arg8[%c0_8, %c0_9], %3 {strides = array<i32>} : memref<8x128xf32, #tpu.memory_space<vmem>>, vector<8x128xf32>,
    } else {
    }
    %c0_i32_4 = arith.constant 0 : i32
    %7 = arith.cmpi sgt, %arg1, %c0_i32_4 : i32
    %8 = arith.extui %7 : i1 to i32
    %c0_i32_5 = arith.constant 0 : i32
    %9 = arith.cmpi ne, %8, %c0_i32_5 : i32
    scf.if %9 {
      %c0_8 = arith.constant 0 : index
      %c0_9 = arith.constant 0 : index
      %13 = vector.load %arg8[%c0_8, %c0_9] : memref<8x128xf32, #tpu.memory_space<vmem>>, vector<8x128xf32>
      %14 = arith.addf %13, %3 : vector<8x128xf32>
      %c0_10 = arith.constant 0 : index
      %c0_11 = arith.constant 0 : index
      %15 = vector.load %arg8[%c0_10, %c0_11] : memref<8x128xf32, #tpu.memory_space<vmem>>, vector<8x128xf32>
      tpu.vector_store %arg8[%c0_10, %c0_11], %14 {strides = array<i32>} : memref<8x128xf32, #tpu.memory_space<vmem>>, vector<8x128xf32>,
    } else {
    }
    %c0_i32_6 = arith.constant 0 : i32
    %10 = arith.cmpi eq, %arg1, %c0_i32_6 : i32
    %11 = arith.extui %10 : i1 to i32
    %c0_i32_7 = arith.constant 0 : i32
    %12 = arith.cmpi ne, %11, %c0_i32_7 : i32
    scf.if %12 {
      %c0_8 = arith.constant 0 : index
      %c0_9 = arith.constant 0 : index
      %13 = vector.load %arg8[%c0_8, %c0_9] : memref<8x128xf32, #tpu.memory_space<vmem>>, vector<8x128xf32>
      %c0_10 = arith.constant 0 : index
      %c0_11 = arith.constant 0 : index
      %14 = vector.load %arg4[%c0_10, %c0_11] : memref<1x128xf32, #tpu.memory_space<vmem>>, vector<1x128xf32>
      %15 = vector.broadcast %14 : vector<1x128xf32> to vector<8x128xf32>
      %16 = arith.addf %13, %15 : vector<8x128xf32>
      %17 = math.tanh %16 : vector<8x128xf32>
      %18 = arith.truncf %17 : vector<8x128xf32> to vector<8x128xbf16>
      %c0_12 = arith.constant 0 : index
      %c0_13 = arith.constant 0 : index
      %19 = vector.load %arg5[%c0_12, %c0_13] : memref<128x128xbf16, #tpu.memory_space<vmem>>, vector<128x128xbf16>
      %cst_14 = arith.constant dense<0.000000e+00> : vector<8x128xf32>
      %20 = tpu.matmul %18, %19, %cst_14 {dimension_numbers = #tpu.dot_dimension_numbers<[1], [0], [0], [1], [0, 0, 1, 1], [], []>} : vector<8x128xbf16>, vector<128x128xbf16>, vector<8x128xf32> -> vector<8x128xf32>
      %c0_15 = arith.constant 0 : index
      %c0_16 = arith.constant 0 : index
      %21 = vector.load %arg6[%c0_15, %c0_16] : memref<1x128xf32, #tpu.memory_space<vmem>>, vector<1x128xf32>
      %22 = vector.broadcast %21 : vector<1x128xf32> to vector<8x128xf32>
      %23 = arith.addf %20, %22 : vector<8x128xf32>
      %c0_17 = arith.constant 0 : index
      %c0_18 = arith.constant 0 : index
      %24 = vector.load %arg7[%c0_17, %c0_18] : memref<8x128xf32, #tpu.memory_space<vmem>>, vector<8x128xf32>
      tpu.vector_store %arg7[%c0_17, %c0_18], %23 {strides = array<i32>} : memref<8x128xf32, #tpu.memory_space<vmem>>, vector<8x128xf32>,
    } else {
    }
    return
  }
  func.func @transform_0(%arg0: i32, %arg1: i32) -> (i32, i32) {
    %c0_i32 = arith.constant 0 : i32
    return %arg0, %arg1 : i32, i32
  }
  func.func @transform_1(%arg0: i32, %arg1: i32) -> (i32, i32) {
    %c0_i32 = arith.constant 0 : i32
    %c0_i32_0 = arith.constant 0 : i32
    return %arg1, %c0_i32 : i32, i32
  }
  func.func @transform_2(%arg0: i32, %arg1: i32) -> (i32, i32) {
    %c0_i32 = arith.constant 0 : i32
    %c0_i32_0 = arith.constant 0 : i32
    %c0_i32_1 = arith.constant 0 : i32
    return %c0_i32, %c0_i32_0 : i32, i32
  }
  func.func @transform_3(%arg0: i32, %arg1: i32) -> (i32, i32) {
    %c0_i32 = arith.constant 0 : i32
    %c0_i32_0 = arith.constant 0 : i32
    %c0_i32_1 = arith.constant 0 : i32
    return %c0_i32, %c0_i32_0 : i32, i32
  }
  func.func @transform_4(%arg0: i32, %arg1: i32) -> (i32, i32) {
    %c0_i32 = arith.constant 0 : i32
    %c0_i32_0 = arith.constant 0 : i32
    %c0_i32_1 = arith.constant 0 : i32
    return %c0_i32, %c0_i32_0 : i32, i32
  }
  func.func @transform_5(%arg0: i32, %arg1: i32) -> (i32, i32) {
    %c0_i32 = arith.constant 0 : i32
    %c0_i32_0 = arith.constant 0 : i32
    return %arg0, %c0_i32 : i32, i32
  }
}

</mosaic_0001>

<bundles_post_ra>
// kernel: tpu_custom_call.1
= control target key start
LH: loop header
LB: loop body
LE: loop exit
PB: predicated region body
PF: predicated region fallthrough
CT: control target
= control target key end

     0   :  { %10 = vsyncpa [#allocation4], 0  ;;  %s514_s0 = inlined_call_operand.hbm [shape: f32[8,1024], index: 0, kind: input, shape index: {}]   ;;  %s515_s1 = inlined_call_operand.hbm [shape: bf16[128,128], index: 1, kind: input, shape index: {}]   ;;  %s516_s2 = inlined_call_operand.vmem [shape: f32[1,128], index: 2, kind: input, shape index: {}]   ;;  %s517_s3 = inlined_call_operand.hbm [shape: bf16[128,128], index: 3, kind: input, shape index: {}]   ;;  %s518_s4 = inlined_call_operand.vmem [shape: f32[1,128], index: 4, kind: input, shape index: {}]   ;;  %s519_s5 = inlined_call_operand.hbm [shape: f32[8,128], index: 5, kind: output, shape index: {}]  }
   0x1   :  { %11 = vsyncpa [#allocation7], 0  ;;  %s28_s20 = sshll.u32 %s515_s1, 4  ;;  %s29_s20 = int_to_ptr.hbm [resolvable:$true] %s28_s20 }
   0x2   :  { %12 = vsyncpa [#allocation5], 0  ;;  %s460_s21 = smov [#allocation6]   ;;  %s18_s25 = sshll.u32 %s514_s0, 4  ;;  %s19_s25 = int_to_ptr.hbm [resolvable:$true] %s18_s25 }
   0x3   :  { %s30_s22 = sshll.u32 %s460_s21, 4  ;;  %s461_s26 = smov 64   ;;  %s31_s22 = int_to_ptr.vmem [resolvable:$true] %s30_s22 }
   0x4   :  { %s462_s27 = smov 4   ;;  %s463_s28 = smov [#allocation3]  }
   0x5   :  { %36 = dma.hbm_to_vmem [thread:$0]  %s29_s20, 1024, %s31_s22, [#allocation7], %s461_s26, %s461_s26, %s462_s27  }
   0x6   :  { %s20_s29 = sshll.u32 %s463_s28, 4  ;;  %s43_s7 = sshll.u32 %s517_s3, 4  ;;  %s21_s29 = int_to_ptr.vmem [resolvable:$true] %s20_s29  ;;  %s44_s7 = int_to_ptr.hbm [resolvable:$true] %s43_s7 }
   0x7   :  { %23 = dma.hbm_to_vmem [thread:$0]  %s19_s25, 128, %s21_s29, [#allocation4]  }
   0x8   :  { %s464_s1 = smov [#allocation8]  }
   0x9   :  { %s45_s8 = sshll.u32 %s464_s1, 4  ;;  %s46_s8 = int_to_ptr.vmem [resolvable:$true] %s45_s8 }
   0xa   :  { %51 = dma.hbm_to_vmem [thread:$0]  %s44_s7, 1024, %s46_s8, [#allocation7], %s461_s26, %s461_s26, %s462_s27  }
   0xb   :  { %454 = dma.done.wait [#allocation4], 128  }
   0xc   :  { %455 = vsyncadd [#allocation4], 4294967168 }
   0xd   :  { %456 = dma.done.wait [#allocation7], 2048  }
   0xe   :  { %457 = vsyncadd [#allocation7], 4294965248  ;;  %v339_v0 = vld [vmem:[#allocation6 + $0x38] sm:$0xff]  ;;  %v338_v1 = vld [vmem:[#allocation6 + $0x30] sm:$0xff]  ;;  %s465_s11 = smov [#allocation9]   ;;  %s257_s15 = sshll.u32 %s519_s5, 4  ;;  %s258_s15 = int_to_ptr.hbm [resolvable:$true] %s257_s15 }
   0xf   :  { %132 = vmatpush.bf16.msra.mxu0 %v339_v0  ;;  %v347_v2 = vld [vmem:[#allocation8 + $0x38] sm:$0xff]  ;;  %v346_v3 = vld [vmem:[#allocation8 + $0x30] sm:$0xff]  ;;  %v337_v4 = vld [vmem:[#allocation6 + $0x28] sm:$0xff]  ;;  %s255_s12 = sshll.u32 %s465_s11, 4  ;;  %s256_s12 = int_to_ptr.vmem [resolvable:$true] %s255_s12 }
  0x10   :  { %236 = vmatpush.bf16.msra.mxu1 %v347_v2  ;;  %v345_v5 = vld [vmem:[#allocation8 + $0x28] sm:$0xff]  ;;  %v336_v6 = vld [vmem:[#allocation6 + $0x20] sm:$0xff]  ;;  %v335_v8 = vld [vmem:[#allocation6 + $0x18] sm:$0xff] }
  0x11   :  { %v344_v7 = vld [vmem:[#allocation8 + $0x20] sm:$0xff]  ;;  %v343_v9 = vld [vmem:[#allocation8 + $0x18] sm:$0xff]  ;;  %v334_v10 = vld [vmem:[#allocation6 + $0x10] sm:$0xff] }
  0x12   :  { %v333_v11 = vld [vmem:[#allocation6 + $0x8] sm:$0xff]  ;;  %v332_v12 = vld [vmem:[#allocation6] sm:$0xff]  ;;  %v66_v13 = vld [vmem:[#allocation3] sm:$0xff] }
  0x13   :  { %133 = vmatpush.bf16.msra.mxu0 %v338_v1  ;;  %v67_v14 = vpack.c.bf16 %v66_v13, %v66_v13  ;;  %v342_v15 = vld [vmem:[#allocation8 + $0x10] sm:$0xff]  ;;  %v341_v16 = vld [vmem:[#allocation8 + $0x8] sm:$0xff]  ;;  %v340_v17 = vld [vmem:[#allocation8] sm:$0xff] }
  0x14   :  { %237 = vmatpush.bf16.msra.mxu1 %v346_v3  ;;  %v354_v18 = vld [vmem:[%s516_s2] ss:$0 sm:$0xff] }
  0x15   :  { %v355_v24 = vld [vmem:[%s518_s4] ss:$0 sm:$0xff] }
  0x17   :  { %134 = vmatpush.bf16.msra.mxu0 %v337_v4 }
  0x18   :  { %238 = vmatpush.bf16.msra.mxu1 %v345_v5 }
  0x1b   :  { %135 = vmatpush.bf16.msra.mxu0 %v336_v6 }
  0x1c   :  { %239 = vmatpush.bf16.msra.mxu1 %v344_v7 }
  0x1f   :  { %136 = vmatpush.bf16.msra.mxu0 %v335_v8 }
  0x20   :  { %240 = vmatpush.bf16.msra.mxu1 %v343_v9 }
  0x23   :  { %137 = vmatpush.bf16.msra.mxu0 %v334_v10 }
  0x24   :  { %241 = vmatpush.bf16.msra.mxu1 %v342_v15 }
  0x27   :  { %138 = vmatpush.bf16.msra.mxu0 %v333_v11 }
  0x28   :  { %242 = vmatpush.bf16.msra.mxu1 %v341_v16 }
  0x2b   :  { %139 = vmatpush.bf16.msra.mxu0 %v332_v12 }
  0x2c   :  { %243 = vmatpush.bf16.msra.mxu1 %v340_v17 }
  0x2e   :  { %140 = vmatmul.bf16.vlgmr.msra.gmra.mxu0 %v67_v14 }
  0xab   :  { %v141_v19 = vpop.f32.mrf.mxu0 }
  0xac   :  { %v165_v20 = vadd.f32 %v354_v18, %v141_v19 }
  0xae   :  { %356 = vtanh.f32 %v165_v20 }
  0xb3   :  { %v143_v21 = vpop.f32.mrf.mxu0 }
  0xb4   :  { %v357_v22 = vpop.eup %356 }
  0xb5   :  { %v167_v23 = vpack.c.bf16 %v357_v22, %v357_v22 }
  0xb7   :  { %244 = vmatmul.bf16.vlgmr.msra.gmra.mxu1 %v167_v23 }
 0x134   :  { %v245_v25 = vpop.f32.mrf.mxu1 }
 0x135   :  { %v246_v26 = vadd.f32 %v355_v24, %v245_v25 }
 0x137   :  { %249 = vst [vmem:[#allocation9] sm:$0xff] %v246_v26 }
 0x138   :  { %260 = dma.vmem_to_hbm [thread:$0]  %s256_s12, 128, %s258_s15, [#allocation5]  }
 0x13c   :  { %v247_v27 = vpop.f32.mrf.mxu1 }
 0x13d   :  { %458 = dma.done.wait [#allocation5], 128  }
 0x13e   :  { %459 = vsyncadd [#allocation5], 4294967168 }
 0x13f   :  { %265 = vsyncpa [#allocation4], 1 }
 0x140   :  { %266 = vsyncpa [#allocation7], 1 }
 0x141   :  { %267 = vsyncpa [#allocation5], 1 }

</bundles_post_ra>
